<compile_context>
chip_gen: v7x
topology: tpu7x:2x2x1
jax: 0.10.0
libtpu: 0.0.40
codegen_flags: <defaults>
</compile_context>

<pallas_src>
import functools

import jax
import jax.numpy as jnp
from jax import lax
from jax.experimental import pallas as pl
from jax.experimental.pallas import tpu as pltpu


def hs_lr_kernel(x_ref, tgt_ref, out_ref, pos_acc, neg_acc, *, alpha, topk, batch):
    eps = 1e-07
    i = pl.program_id(0)
    nb = pl.num_programs(0)

    @pl.when(i == 0)
    def _init():
        pos_acc[0] = 0.0
        neg_acc[0] = 0.0

    x = x_ref[...].astype(jnp.float32)        # [TB, C]
    tgt = tgt_ref[...]                        # [TB, 1] int32 class indices
    tb, c = x.shape

    col = lax.broadcasted_iota(jnp.int32, (tb, c), 1)
    pos_mask = col == tgt                     # [TB, C], exactly one True per row

    # Positive term: gather the positive-class logit per row (exact: sum of a
    # single nonzero lane), then log(sigmoid(.) + eps) on [TB, 1] only.
    x_pos = jnp.sum(jnp.where(pos_mask, x, 0.0), axis=-1, keepdims=True)   # [TB, 1]
    pred_p_pos = jnp.log(jax.nn.sigmoid(x_pos) + eps)                      # [TB, 1]
    pos_partial = jnp.sum(pred_p_pos)

    # Hard-negative confusion: -(1 - t) * log(1 - sigmoid(x) + eps)
    # (exactly 0 at the positive column, matching the PyTorch formula).
    probs = jax.nn.sigmoid(x)
    hard_neg = jnp.where(pos_mask, 0.0, -jnp.log(1.0 - probs + eps))       # [TB, C]

    def select_step(_, carry):
        work, acc = carry
        m = jnp.max(work, axis=-1, keepdims=True)       # one XLU row-reduce / iter
        acc = acc + m
        # Mask the selected maxima.  Exact f32 ties among distinct logits are
        # effectively impossible, so this removes one element per row per step.
        work = jnp.where(work == m, -jnp.inf, work)
        return work, acc

    acc0 = jnp.zeros((tb, 1), jnp.float32)
    if topk <= 8:
        work, row_topk = hard_neg, acc0
        for _ in range(topk):                            # small static unroll
            work, row_topk = select_step(None, (work, row_topk))
    else:
        _, row_topk = lax.fori_loop(0, topk, select_step, (hard_neg, acc0),
                                    unroll=4)
    neg_partial = jnp.sum(row_topk)

    pos_acc[0] += pos_partial
    neg_acc[0] += neg_partial

    @pl.when(i == nb - 1)
    def _finalize():
        count_pos = jnp.float32(batch)                   # one positive per row
        pos_term = pos_acc[0] / count_pos
        topk_neg_mean = -neg_acc[0] / jnp.float32(batch * topk)
        loss = pos_term + alpha * topk_neg_mean
        out_ref[0] = -1.0 * loss


def _pick_row_tile(batch, num_classes):
    """Largest row tile that (a) divides batch, (b) is a multiple of 8 (or the
    whole batch), and (c) keeps one f32 block around ~2 MiB so double-buffered
    inputs plus in-kernel temporaries fit v7x's smaller VMEM."""
    max_rows = max(8, (2 * 1024 * 1024) // (4 * num_classes))
    if batch <= max_rows:
        return batch
    cap = min(batch, max_rows)
    cap -= cap % 8
    for t in range(cap, 7, -8):
        if batch % t == 0:
            return t
    return batch


def hs_lr(inputs, targets, num_classes, alpha, topratio):
    """Pallas HS_LR forward. inputs: [B, num_classes] float, targets: [B] int."""
    B, C = inputs.shape
    assert C == num_classes
    topk = int(num_classes * topratio)
    assert topk >= 1, "int(num_classes * topratio) must be >= 1"

    tb = _pick_row_tile(B, C)
    nb = B // tb
    assert nb * tb == B

    tgt2d = targets.astype(jnp.int32).reshape(B, 1)
    kernel = functools.partial(hs_lr_kernel, alpha=float(alpha), topk=topk, batch=B)

    grid_spec = pltpu.PrefetchScalarGridSpec(
        num_scalar_prefetch=0,
        grid=(nb,),
        in_specs=[
            pl.BlockSpec((tb, C), lambda i: (i, 0)),
            pl.BlockSpec((tb, 1), lambda i: (i, 0)),
        ],
        out_specs=pl.BlockSpec(memory_space=pltpu.MemorySpace.SMEM),
        scratch_shapes=[
            pltpu.SMEM((1,), jnp.float32),   # positive log-prob accumulator
            pltpu.SMEM((1,), jnp.float32),   # top-k hard-negative accumulator
        ],
    )

    out = pl.pallas_call(
        kernel,
        out_shape=jax.ShapeDtypeStruct((1,), jnp.float32),
        grid_spec=grid_spec,
        compiler_params=pltpu.CompilerParams(
            dimension_semantics=("arbitrary",),        # accumulator carried over B
            vmem_limit_bytes=40 * 1024 * 1024,
        ),
    )(inputs.astype(jnp.float32), tgt2d)
    return out[0]


def hs_lr_reference(inputs, targets, num_classes, alpha, topratio):
    """Pure-JAX reference mirroring the PyTorch forward."""
    eps = 1e-07
    topk = int(num_classes * topratio)
    probs = jax.nn.sigmoid(inputs)
    t = jax.nn.one_hot(targets, num_classes, dtype=jnp.float32)
    pred_p = jnp.log(probs + eps)
    pred_n = jnp.log(1.0 - probs + eps)
    count_pos = jnp.sum(t)
    hard_neg = -1.0 * (1.0 - t) * pred_n
    topk_vals, _ = lax.top_k(hard_neg, topk)
    topk_neg_loss = -1.0 * topk_vals
    loss = jnp.sum(t * pred_p) / count_pos + alpha * jnp.mean(topk_neg_loss)
    return -1.0 * loss


if __name__ == "__main__":
    B = 8
    num_classes = 32
    alpha = 0.25
    topratio = 0.25        # topk = int(32 * 0.25) = 8

    key = jax.random.PRNGKey(0)
    k_in, k_tg = jax.random.split(key)
    inputs = jax.random.normal(k_in, (B, num_classes), dtype=jnp.float32)
    targets = jax.random.randint(k_tg, (B,), 0, num_classes, dtype=jnp.int32)

    out = hs_lr(inputs, targets, num_classes, alpha, topratio)
    out = jax.block_until_ready(out)

    ref = hs_lr_reference(inputs, targets, num_classes, alpha, topratio)
    assert jnp.allclose(out, ref, rtol=1e-5, atol=1e-5), (out, ref)

    print("KERNEL_OK")
</pallas_src>

<mosaic_0001>
module attributes {stable_mosaic.version = 11 : i64} {
  func.func @hs_lr_kernel(%arg0: i32, %arg1: memref<8x32xf32, #tpu.memory_space<vmem>>, %arg2: memref<8x1xi32, #tpu.memory_space<vmem>>, %arg3: memref<1xf32, #tpu.memory_space<smem>>, %arg4: memref<1xf32, #tpu.memory_space<smem>>, %arg5: memref<1xf32, #tpu.memory_space<smem>>) attributes {dimension_semantics = [#tpu.dimension_semantics<arbitrary>], iteration_bounds = array<i64: 1>, scalar_prefetch = 0 : i64, scratch_operands = 2 : i64, tpu.core_type = #tpu.core_type<tc>, window_params = [{transform_indices = @transform_0, window_bounds = array<i64: 8, 32>}, {transform_indices = @transform_1, window_bounds = array<i64: 8, 1>}, {transform_indices = @transform_2, window_bounds = array<i64: 1>}]} {
    %c0_i32 = arith.constant 0 : i32
    %0 = arith.cmpi eq, %arg0, %c0_i32 : i32
    %1 = arith.extui %0 : i1 to i32
    %c0_i32_0 = arith.constant 0 : i32
    %2 = arith.cmpi ne, %1, %c0_i32_0 : i32
    scf.if %2 {
      %cst_36 = arith.constant 0.000000e+00 : f32
      %c0_37 = arith.constant 0 : index
      %104 = memref.load %arg4[%c0_37] : memref<1xf32, #tpu.memory_space<smem>>
      memref.store %cst_36, %arg4[%c0_37] : memref<1xf32, #tpu.memory_space<smem>>
      %cst_38 = arith.constant 0.000000e+00 : f32
      %c0_39 = arith.constant 0 : index
      %105 = memref.load %arg5[%c0_39] : memref<1xf32, #tpu.memory_space<smem>>
      memref.store %cst_38, %arg5[%c0_39] : memref<1xf32, #tpu.memory_space<smem>>
    } else {
    }
    %c0 = arith.constant 0 : index
    %c0_1 = arith.constant 0 : index
    %3 = vector.load %arg1[%c0, %c0_1] : memref<8x32xf32, #tpu.memory_space<vmem>>, vector<8x32xf32>
    %c0_2 = arith.constant 0 : index
    %c0_3 = arith.constant 0 : index
    %4 = vector.load %arg2[%c0_2, %c0_3] : memref<8x1xi32, #tpu.memory_space<vmem>>, vector<8x1xi32>
    %5 = tpu.iota {dimensions = array<i32: 1>} : vector<8x32xi32>
    %6 = vector.broadcast %4 : vector<8x1xi32> to vector<8x32xi32>
    %7 = arith.cmpi eq, %5, %6 : vector<8x32xi32>
    %cst = arith.constant 0.000000e+00 : f32
    %8 = vector.broadcast %cst : f32 to vector<8x32xf32>
    %9 = arith.select %7, %3, %8 : vector<8x32xi1>, vector<8x32xf32>
    %cst_4 = arith.constant dense<0.000000e+00> : vector<8xf32>
    %10 = vector.multi_reduction <add>, %9, %cst_4 [1] : vector<8x32xf32> to vector<8xf32>
    %11 = vector.shape_cast %10 : vector<8xf32> to vector<8x1xf32>
    %12 = arith.negf %11 : vector<8x1xf32>
    %13 = math.exp %12 : vector<8x1xf32>
    %cst_5 = arith.constant 1.000000e+00 : f32
    %14 = vector.broadcast %cst_5 : f32 to vector<8x1xf32>
    %15 = arith.addf %14, %13 : vector<8x1xf32>
    %16 = arith.divf %14, %15 : vector<8x1xf32>
    %cst_6 = arith.constant 1.000000e-07 : f32
    %17 = vector.broadcast %cst_6 : f32 to vector<8x1xf32>
    %18 = arith.addf %16, %17 : vector<8x1xf32>
    %19 = math.log %18 : vector<8x1xf32>
    %20 = vector.shape_cast %19 : vector<8x1xf32> to vector<1x8x1xf32>
    %cst_7 = arith.constant dense<0.000000e+00> : vector<1xf32>
    %21 = vector.multi_reduction <add>, %20, %cst_7 [1, 2] : vector<1x8x1xf32> to vector<1xf32>
    %22 = vector.shape_cast %21 : vector<1xf32> to vector<1x1x1xf32>
    %23 = vector.extract %22[0, 0, 0] : f32 from vector<1x1x1xf32>
    %24 = arith.negf %3 : vector<8x32xf32>
    %25 = math.exp %24 : vector<8x32xf32>
    %cst_8 = arith.constant 1.000000e+00 : f32
    %26 = vector.broadcast %cst_8 : f32 to vector<8x32xf32>
    %27 = arith.addf %26, %25 : vector<8x32xf32>
    %28 = arith.divf %26, %27 : vector<8x32xf32>
    %cst_9 = arith.constant 1.000000e+00 : f32
    %29 = vector.broadcast %cst_9 : f32 to vector<8x32xf32>
    %30 = arith.subf %29, %28 : vector<8x32xf32>
    %cst_10 = arith.constant 1.000000e-07 : f32
    %31 = vector.broadcast %cst_10 : f32 to vector<8x32xf32>
    %32 = arith.addf %30, %31 : vector<8x32xf32>
    %33 = math.log %32 : vector<8x32xf32>
    %cst_11 = arith.constant 0.000000e+00 : f32
    %34 = vector.broadcast %cst_11 : f32 to vector<8x32xf32>
    %35 = arith.subf %34, %33 : vector<8x32xf32>
    %cst_12 = arith.constant 0.000000e+00 : f32
    %36 = vector.broadcast %cst_12 : f32 to vector<8x32xf32>
    %37 = arith.select %7, %36, %35 : vector<8x32xi1>, vector<8x32xf32>
    %cst_13 = arith.constant 0.000000e+00 : f32
    %38 = vector.broadcast %cst_13 : f32 to vector<8x1xf32>
    %cst_14 = arith.constant dense<0xFF800000> : vector<8xf32>
    %39 = vector.multi_reduction <maximumf>, %37, %cst_14 [1] : vector<8x32xf32> to vector<8xf32>
    %40 = vector.shape_cast %39 : vector<8xf32> to vector<8x1xf32>
    %41 = arith.addf %38, %40 : vector<8x1xf32>
    %42 = vector.broadcast %40 : vector<8x1xf32> to vector<8x32xf32>
    %43 = arith.cmpf oeq, %37, %42 : vector<8x32xf32>
    %cst_15 = arith.constant 0xFF800000 : f32
    %44 = vector.broadcast %cst_15 : f32 to vector<8x32xf32>
    %45 = arith.select %43, %44, %37 : vector<8x32xi1>, vector<8x32xf32>
    %cst_16 = arith.constant dense<0xFF800000> : vector<8xf32>
    %46 = vector.multi_reduction <maximumf>, %45, %cst_16 [1] : vector<8x32xf32> to vector<8xf32>
    %47 = vector.shape_cast %46 : vector<8xf32> to vector<8x1xf32>
    %48 = arith.addf %41, %47 : vector<8x1xf32>
    %49 = vector.broadcast %47 : vector<8x1xf32> to vector<8x32xf32>
    %50 = arith.cmpf oeq, %45, %49 : vector<8x32xf32>
    %cst_17 = arith.constant 0xFF800000 : f32
    %51 = vector.broadcast %cst_17 : f32 to vector<8x32xf32>
    %52 = arith.select %50, %51, %45 : vector<8x32xi1>, vector<8x32xf32>
    %cst_18 = arith.constant dense<0xFF800000> : vector<8xf32>
    %53 = vector.multi_reduction <maximumf>, %52, %cst_18 [1] : vector<8x32xf32> to vector<8xf32>
    %54 = vector.shape_cast %53 : vector<8xf32> to vector<8x1xf32>
    %55 = arith.addf %48, %54 : vector<8x1xf32>
    %56 = vector.broadcast %54 : vector<8x1xf32> to vector<8x32xf32>
    %57 = arith.cmpf oeq, %52, %56 : vector<8x32xf32>
    %cst_19 = arith.constant 0xFF800000 : f32
    %58 = vector.broadcast %cst_19 : f32 to vector<8x32xf32>
    %59 = arith.select %57, %58, %52 : vector<8x32xi1>, vector<8x32xf32>
    %cst_20 = arith.constant dense<0xFF800000> : vector<8xf32>
    %60 = vector.multi_reduction <maximumf>, %59, %cst_20 [1] : vector<8x32xf32> to vector<8xf32>
    %61 = vector.shape_cast %60 : vector<8xf32> to vector<8x1xf32>
    %62 = arith.addf %55, %61 : vector<8x1xf32>
    %63 = vector.broadcast %61 : vector<8x1xf32> to vector<8x32xf32>
    %64 = arith.cmpf oeq, %59, %63 : vector<8x32xf32>
    %cst_21 = arith.constant 0xFF800000 : f32
    %65 = vector.broadcast %cst_21 : f32 to vector<8x32xf32>
    %66 = arith.select %64, %65, %59 : vector<8x32xi1>, vector<8x32xf32>
    %cst_22 = arith.constant dense<0xFF800000> : vector<8xf32>
    %67 = vector.multi_reduction <maximumf>, %66, %cst_22 [1] : vector<8x32xf32> to vector<8xf32>
    %68 = vector.shape_cast %67 : vector<8xf32> to vector<8x1xf32>
    %69 = arith.addf %62, %68 : vector<8x1xf32>
    %70 = vector.broadcast %68 : vector<8x1xf32> to vector<8x32xf32>
    %71 = arith.cmpf oeq, %66, %70 : vector<8x32xf32>
    %cst_23 = arith.constant 0xFF800000 : f32
    %72 = vector.broadcast %cst_23 : f32 to vector<8x32xf32>
    %73 = arith.select %71, %72, %66 : vector<8x32xi1>, vector<8x32xf32>
    %cst_24 = arith.constant dense<0xFF800000> : vector<8xf32>
    %74 = vector.multi_reduction <maximumf>, %73, %cst_24 [1] : vector<8x32xf32> to vector<8xf32>
    %75 = vector.shape_cast %74 : vector<8xf32> to vector<8x1xf32>
    %76 = arith.addf %69, %75 : vector<8x1xf32>
    %77 = vector.broadcast %75 : vector<8x1xf32> to vector<8x32xf32>
    %78 = arith.cmpf oeq, %73, %77 : vector<8x32xf32>
    %cst_25 = arith.constant 0xFF800000 : f32
    %79 = vector.broadcast %cst_25 : f32 to vector<8x32xf32>
    %80 = arith.select %78, %79, %73 : vector<8x32xi1>, vector<8x32xf32>
    %cst_26 = arith.constant dense<0xFF800000> : vector<8xf32>
    %81 = vector.multi_reduction <maximumf>, %80, %cst_26 [1] : vector<8x32xf32> to vector<8xf32>
    %82 = vector.shape_cast %81 : vector<8xf32> to vector<8x1xf32>
    %83 = arith.addf %76, %82 : vector<8x1xf32>
    %84 = vector.broadcast %82 : vector<8x1xf32> to vector<8x32xf32>
    %85 = arith.cmpf oeq, %80, %84 : vector<8x32xf32>
    %cst_27 = arith.constant 0xFF800000 : f32
    %86 = vector.broadcast %cst_27 : f32 to vector<8x32xf32>
    %87 = arith.select %85, %86, %80 : vector<8x32xi1>, vector<8x32xf32>
    %cst_28 = arith.constant dense<0xFF800000> : vector<8xf32>
    %88 = vector.multi_reduction <maximumf>, %87, %cst_28 [1] : vector<8x32xf32> to vector<8xf32>
    %89 = vector.shape_cast %88 : vector<8xf32> to vector<8x1xf32>
    %90 = arith.addf %83, %89 : vector<8x1xf32>
    %91 = vector.shape_cast %90 : vector<8x1xf32> to vector<1x8x1xf32>
    %cst_29 = arith.constant dense<0.000000e+00> : vector<1xf32>
    %92 = vector.multi_reduction <add>, %91, %cst_29 [1, 2] : vector<1x8x1xf32> to vector<1xf32>
    %93 = vector.shape_cast %92 : vector<1xf32> to vector<1x1x1xf32>
    %94 = vector.extract %93[0, 0, 0] : f32 from vector<1x1x1xf32>
    %c0_30 = arith.constant 0 : index
    %95 = memref.load %arg4[%c0_30] : memref<1xf32, #tpu.memory_space<smem>>
    %96 = arith.addf %95, %23 : f32
    %c0_31 = arith.constant 0 : index
    %97 = memref.load %arg4[%c0_31] : memref<1xf32, #tpu.memory_space<smem>>
    memref.store %96, %arg4[%c0_31] : memref<1xf32, #tpu.memory_space<smem>>
    %c0_32 = arith.constant 0 : index
    %98 = memref.load %arg5[%c0_32] : memref<1xf32, #tpu.memory_space<smem>>
    %99 = arith.addf %98, %94 : f32
    %c0_33 = arith.constant 0 : index
    %100 = memref.load %arg5[%c0_33] : memref<1xf32, #tpu.memory_space<smem>>
    memref.store %99, %arg5[%c0_33] : memref<1xf32, #tpu.memory_space<smem>>
    %c0_i32_34 = arith.constant 0 : i32
    %101 = arith.cmpi eq, %arg0, %c0_i32_34 : i32
    %102 = arith.extui %101 : i1 to i32
    %c0_i32_35 = arith.constant 0 : i32
    %103 = arith.cmpi ne, %102, %c0_i32_35 : i32
    scf.if %103 {
      %c0_36 = arith.constant 0 : index
      %104 = memref.load %arg4[%c0_36] : memref<1xf32, #tpu.memory_space<smem>>
      %cst_37 = arith.constant 8.000000e+00 : f32
      %105 = arith.divf %104, %cst_37 : f32
      %c0_38 = arith.constant 0 : index
      %106 = memref.load %arg5[%c0_38] : memref<1xf32, #tpu.memory_space<smem>>
      %cst_39 = arith.constant 0.000000e+00 : f32
      %107 = arith.subf %cst_39, %106 : f32
      %cst_40 = arith.constant 6.400000e+01 : f32
      %108 = arith.divf %107, %cst_40 : f32
      %cst_41 = arith.constant 2.500000e-01 : f32
      %109 = arith.mulf %cst_41, %108 : f32
      %110 = arith.addf %105, %109 : f32
      %cst_42 = arith.constant -1.000000e+00 : f32
      %111 = arith.mulf %cst_42, %110 : f32
      %c0_43 = arith.constant 0 : index
      %112 = memref.load %arg3[%c0_43] : memref<1xf32, #tpu.memory_space<smem>>
      memref.store %111, %arg3[%c0_43] : memref<1xf32, #tpu.memory_space<smem>>
    } else {
    }
    return
  }
  func.func @transform_0(%arg0: i32) -> (i32, i32) {
    %c0_i32 = arith.constant 0 : i32
    %c0_i32_0 = arith.constant 0 : i32
    return %arg0, %c0_i32 : i32, i32
  }
  func.func @transform_1(%arg0: i32) -> (i32, i32) {
    %c0_i32 = arith.constant 0 : i32
    %c0_i32_0 = arith.constant 0 : i32
    return %arg0, %c0_i32 : i32, i32
  }
  func.func @transform_2(%arg0: i32) -> i32 {
    %c0_i32 = arith.constant 0 : i32
    %c0_i32_0 = arith.constant 0 : i32
    return %c0_i32 : i32
  }
}

</mosaic_0001>

<bundles_post_ra>
// kernel: tpu_custom_call.1
= control target key start
LH: loop header
LB: loop body
LE: loop exit
PB: predicated region body
PF: predicated region fallthrough
CT: control target
= control target key end

     0   :  { %s238_s0 = inlined_call_operand.vmem [shape: f32[8,32], index: 0, kind: input, shape index: {}]   ;;  %s239_s1 = inlined_call_operand.vmem [shape: s32[8,1], index: 1, kind: input, shape index: {}]   ;;  %s240_s2 = inlined_call_operand.hbm [shape: f32[1], index: 2, kind: output, shape index: {}]  }
   0x1   :  { %v21_v0 = vld [vmem:[%s239_s1] sm:$0xff] }
   0x2   :  { %7 = vsyncpa [#allocation5], 0  ;;  %v192_v1 = vmov 0   ;;  %v20_v2 = vld [vmem:[%s238_s0] sm:$0xff]  ;;  %v22_v10 = vlaneseq  ;;  %vm29_vm0 = vcmask 261120   ;;  %vm42_vm9 = vcmask 7168  }
   0x3   :  { %167 = vset.pattern.permute.xlu0 %v192_v1  ;;  %v160_v3 = vmul.f32 -1.442695, %v20_v2  ;;  %s180_s21 = scalar_lea.hbm %s240_s2, 16 }
   0x4   :  { %25 = vperm.xlu0 %167, %v21_v0   ;;  %v23_v12 = vand.u32 127, %v22_v10  ;;  %p181_p0 = scmp.ne.s32.totalorder %s240_s2, %s180_s21  ;;  %p184_p1 = scmp.lt.u32.totalorder %s180_s21, %s240_s2 }
   0x5   :  { %168 = vpow2.f32 %v160_v3 }
   0x6   :  { %p186_p2 = pnand %p184_p1, %p181_p0 }
   0xf   :  { %v169_v4 = vpop.eup %168 }
  0x10   :  { %v56_v5 = vadd.f32 1.0, %v169_v4 }
  0x12   :  { %170 = vrcp.f32 %v56_v5 }
  0x1c   :  { %v171_v6 = vpop.eup %170 }
  0x1d   :  { %v59_v7 = vsub.f32 1.0, %v171_v6 }
  0x1f   :  { %v60_v8 = vadd.f32 1e-07, %v59_v7 }
  0x21   :  { %172 = vlog2.f32 %v60_v8 }
  0x2b   :  { %v173_v9 = vpop.eup %172 }
  0x2c   :  { %v62_v11 = vmul.f32 0.6931472, %v173_v9 }
  0x2e   :  { %v63_v13 = vsub.f32 0.0, %v62_v11 }
  0x83   :  { %v26_v14 = vpop.permute.xlu0 %25 }
  0x84   :  { %vm27_vm1 = vcmp.eq.s32.totalorder %v23_v12, %v26_v14 }
  0x85   :  { %v64_v15 = vsel %vm27_vm1, 0.0, %v63_v13  ;;  %v28_v35 = vsel %vm27_vm1, %v20_v2, 0.0 }
  0x86   :  { %v65_v16 = vsel %vm29_vm0, %v64_v15, -inf  ;;  %v30_v36 = vsel %vm29_vm0, %v28_v35, 0.0 }
  0x87   :  { %66 = vmax.xlane.f32.xlu0 %v65_v16 }
 0x114   :  { %v67_v17 = vpop.xlane.xlu0 %66 }
 0x115   :  { %vm69_vm2 = vcmp.eq.f32.partialorder %v64_v15, %v67_v17 }
 0x116   :  { %v70_v18 = vsel %vm69_vm2, -inf, %v64_v15 }
 0x117   :  { %v71_v19 = vsel %vm29_vm0, %v70_v18, -inf }
 0x118   :  { %72 = vmax.xlane.f32.xlu1 %v71_v19 }
 0x1a5   :  { %v73_v20 = vpop.xlane.xlu1 %72 }
 0x1a6   :  { %vm75_vm3 = vcmp.eq.f32.partialorder %v70_v18, %v73_v20  ;;  %v74_v49 = vadd.f32 %v73_v20, %v67_v17 }
 0x1a7   :  { %v76_v21 = vsel %vm75_vm3, -inf, %v70_v18 }
 0x1a8   :  { %v77_v22 = vsel %vm29_vm0, %v76_v21, -inf }
 0x1a9   :  { %78 = vmax.xlane.f32.xlu1 %v77_v22 }
 0x236   :  { %v79_v23 = vpop.xlane.xlu1 %78 }
 0x237   :  { %vm81_vm4 = vcmp.eq.f32.partialorder %v76_v21, %v79_v23  ;;  %v80_v50 = vadd.f32 %v79_v23, %v74_v49 }
 0x238   :  { %v82_v24 = vsel %vm81_vm4, -inf, %v76_v21 }
 0x239   :  { %v83_v25 = vsel %vm29_vm0, %v82_v24, -inf }
 0x23a   :  { %84 = vmax.xlane.f32.xlu1 %v83_v25 }
 0x2c7   :  { %v85_v26 = vpop.xlane.xlu1 %84 }
 0x2c8   :  { %vm87_vm5 = vcmp.eq.f32.partialorder %v82_v24, %v85_v26  ;;  %v86_v51 = vadd.f32 %v85_v26, %v80_v50 }
 0x2c9   :  { %v88_v27 = vsel %vm87_vm5, -inf, %v82_v24 }
 0x2ca   :  { %v89_v28 = vsel %vm29_vm0, %v88_v27, -inf }
 0x2cb   :  { %90 = vmax.xlane.f32.xlu1 %v89_v28 }
 0x358   :  { %v91_v29 = vpop.xlane.xlu1 %90 }
 0x359   :  { %vm93_vm6 = vcmp.eq.f32.partialorder %v88_v27, %v91_v29  ;;  %v92_v52 = vadd.f32 %v91_v29, %v86_v51 }
 0x35a   :  { %v94_v30 = vsel %vm93_vm6, -inf, %v88_v27 }
 0x35b   :  { %v95_v31 = vsel %vm29_vm0, %v94_v30, -inf }
 0x35c   :  { %96 = vmax.xlane.f32.xlu1 %v95_v31 }
 0x3e9   :  { %v97_v32 = vpop.xlane.xlu1 %96 }
 0x3ea   :  { %vm99_vm7 = vcmp.eq.f32.partialorder %v94_v30, %v97_v32  ;;  %v98_v53 = vadd.f32 %v97_v32, %v92_v52 }
 0x3eb   :  { %v100_v33 = vsel %vm99_vm7, -inf, %v94_v30 }
 0x3ec   :  { %v101_v34 = vsel %vm29_vm0, %v100_v33, -inf }
 0x3ed   :  { %102 = vmax.xlane.f32.xlu1 %v101_v34 }
 0x3f1   :  { %31 = vadd.xlane.f32.xlu1 %v30_v36 }
 0x47a   :  { %v103_v37 = vpop.xlane.xlu1 %102 }
 0x47b   :  { %vm105_vm8 = vcmp.eq.f32.partialorder %v100_v33, %v103_v37  ;;  %v104_v54 = vadd.f32 %v103_v37, %v98_v53 }
 0x47c   :  { %v106_v38 = vsel %vm105_vm8, -inf, %v100_v33 }
 0x47d   :  { %v107_v39 = vsel %vm29_vm0, %v106_v38, -inf }
 0x47e   :  { %108 = vmax.xlane.f32.xlu1 %v107_v39  ;;  %v32_v40 = vpop.xlane.xlu1 %31 }
 0x47f   :  { %v159_v41 = vmul.f32 -1.442695, %v32_v40 }
 0x481   :  { %174 = vpow2.f32 %v159_v41 }
 0x48b   :  { %v175_v42 = vpop.eup %174 }
 0x48c   :  { %v36_v43 = vadd.f32 1.0, %v175_v42 }
 0x48e   :  { %176 = vrcp.f32 %v36_v43 }
 0x498   :  { %v177_v44 = vpop.eup %176 }
 0x499   :  { %v39_v45 = vadd.f32 1e-07, %v177_v44 }
 0x49b   :  { %178 = vlog2.f32 %v39_v45 }
 0x4a5   :  { %v179_v46 = vpop.eup %178 }
 0x4a6   :  { %v41_v47 = vmul.f32 0.6931472, %v179_v46 }
 0x4a8   :  { %v43_v48 = vsel %vm42_vm9, %v41_v47, 0.0 }
 0x4a9   :  { %44 = vadd.xlane.f32.xlu1 %v43_v48 }
 0x50b   :  { %v109_v55 = vpop.xlane.xlu1 %108 }
 0x50c   :  { %v110_v56 = vadd.f32 %v109_v55, %v104_v54 }
 0x50e   :  { %v111_v57 = vsel %vm42_vm9, %v110_v56, 0.0 }
 0x50f   :  { %112 = vadd.xlane.f32.xlu0 %v111_v57 }
 0x536   :  { %v45_v58 = vpop.xlane.xlu1 %44 }
 0x537   :  { %v46_v59 = vrot.slane %v45_v58, 4 }
 0x539   :  { %v47_v60 = vadd.f32 %v46_v59, %v45_v58 }
 0x53b   :  { %v48_v61 = vrot.slane %v47_v60, 2 }
 0x53d   :  { %v49_v62 = vadd.f32 %v48_v61, %v47_v60 }
 0x53f   :  { %v50_v63 = vrot.slane %v49_v62, 1 }
 0x541   :  { %v51_v0 = vadd.f32 %v50_v63, %v49_v62 }
 0x543   :  { %161 = vpush %v51_v0 }
 0x574   :  { %s162_s0 = spop %161 }
 0x575   :  { %s135_s15 = smul.f32 0.125, %s162_s0 }
 0x59c   :  { %v113_v1 = vpop.xlane.xlu0 %112 }
 0x59d   :  { %v114_v2 = vrot.slane %v113_v1, 4 }
 0x59f   :  { %v115_v3 = vadd.f32 %v114_v2, %v113_v1 }
 0x5a1   :  { %v116_v4 = vrot.slane %v115_v3, 2 }
 0x5a3   :  { %v117_v5 = vadd.f32 %v116_v4, %v115_v3 }
 0x5a5   :  { %v118_v6 = vrot.slane %v117_v5, 1 }
 0x5a7   :  { %v119_v7 = vadd.f32 %v118_v6, %v117_v5 }
 0x5a9   :  { %163 = vpush %v119_v7 }
 0x5da   :  { %s164_s1 = spop %163 }
 0x5db   :  { %s137_s13 = ssub.f32 0.0, %s164_s1 }
 0x5dd   :  { %s140_s14 = smul.f32 0.015625, %s137_s13 }
 0x5df   :  { %s141_s16 = smul.f32 0.25, %s140_s14 }
 0x5e1   :  { %s142_s17 = sadd.f32 %s141_s16, %s135_s15 }
 0x5e3   :  { %s143_s18 = smul.f32 -1.0, %s142_s17 }
 0x5e5   :  { %145 = sst [smem:[#allocation4]] %s143_s18 }
 0x5e6   :  { %189 = shalt.err (!%p186_p2)
}
 0x5e7   :  { %s193_s26 = smov [#allocation4]  }
 0x5e8   :  { %153 = dma.smem_to_hbm %s193_s26, 16, %s240_s2, [#allocation5]  }
 0x5e9   :  { %190 = dma.done.wait [#allocation5], 16  }
 0x5ea   :  { %191 = vsyncadd [#allocation5], 4294967280 }
 0x5eb   :  { %157 = sfence }
 0x5ec   :  { %158 = vsyncpa [#allocation5], 1 }

</bundles_post_ra>
